<compile_context>
chip_gen: v6e
topology: v6e:2x2x1
jax: 0.10.0
libtpu: 0.0.40
codegen_flags: <defaults>
</compile_context>

<pallas_src>
import math
import functools

import jax
import jax.numpy as jnp
from jax import lax
from jax.experimental import pallas as pl
from jax.experimental.pallas import tpu as pltpu


def _flash_attn_kernel(vl_smem_ref, q_ref, k_ref, v_ref, vl_ref, o_ref,
                       m_sc, l_sc, acc_sc, *, scale, tb, tk):
    """One grid step: (batch block b, Q tile qi, K tile ki).

    q_ref  : (tb, tq, D)   VMEM (input dtype)
    k_ref  : (tb, tk, D)   VMEM (input dtype)
    v_ref  : (tb, tk, Dv)  VMEM (input dtype)
    vl_ref : (tb, 1, 1)    VMEM int32 (per-row valid lens, for the vector mask)
    o_ref  : (tb, tq, Dv)  VMEM (output, written on last K tile)
    vl_smem_ref : (B,) int32 SMEM (scalar prefetch, for the K-tile skip)
    m_sc / l_sc / acc_sc : f32 online-softmax scratch.
    """
    ki = pl.program_id(2)
    num_k = pl.num_programs(2)
    b0 = pl.program_id(0) * tb
    k_start = ki * tk

    @pl.when(ki == 0)
    def _init():
        m_sc[...] = jnp.full_like(m_sc, -jnp.inf)
        l_sc[...] = jnp.zeros_like(l_sc)
        acc_sc[...] = jnp.zeros_like(acc_sc)

    # Largest valid length across the batch rows of this block (scalar SMEM reads):
    # K tiles starting at/after it are fully masked for every row -> skip them.
    vl_max = vl_smem_ref[b0]
    for i in range(1, tb):
        vl_max = jnp.maximum(vl_max, vl_smem_ref[b0 + i])

    # Always process tile 0 so l_sc > 0 even for the degenerate valid_len == 0 case.
    @pl.when(jnp.logical_or(ki == 0, k_start < vl_max))
    def _compute():
        q = q_ref[...]            # keep input dtype: MXU consumes bf16/f32 natively
        k = k_ref[...]
        v = v_ref[...]

        # scores = Q @ K^T / sqrt(D): contract last dims, batch dim 0 (no transpose).
        s = lax.dot_general(
            q, k, (((2,), (2,)), ((0,), (0,))),
            preferred_element_type=jnp.float32) * scale          # (tb, tq, tk) f32

        # masked_softmax semantics: positions >= valid_len set to -1e6 pre-softmax.
        col = lax.broadcasted_iota(jnp.int32, s.shape, 2) + k_start
        s = jnp.where(col < vl_ref[...], s, jnp.float32(-1000000.0))

        # Online (flash-style) softmax accumulation, f32 vector math.
        m_prev = m_sc[...]
        m_new = jnp.maximum(m_prev, jnp.max(s, axis=-1, keepdims=True))
        alpha = jnp.exp(m_prev - m_new)
        p = jnp.exp(s - m_new)
        l_sc[...] = alpha * l_sc[...] + jnp.sum(p, axis=-1, keepdims=True)
        pv = lax.dot_general(
            p.astype(v.dtype), v, (((2,), (1,)), ((0,), (0,))),
            preferred_element_type=jnp.float32)                  # (tb, tq, Dv)
        acc_sc[...] = alpha * acc_sc[...] + pv
        m_sc[...] = m_new

    @pl.when(ki == num_k - 1)
    def _finalize():
        inv_l = pl.reciprocal(l_sc[...], approx=True)
        o_ref[...] = (acc_sc[...] * inv_l).astype(o_ref.dtype)


def _pick_seq_tile(n, target):
    """Largest multiple-of-8 tile <= target that divides n, else the full extent."""
    if n <= target:
        return n
    t = (target // 8) * 8
    while t >= 8:
        if n % t == 0:
            return t
        t -= 8
    return n


def _pick_batch_tile(b, q, k):
    """Fold several batch elements per grid step in the tiny-problem regime."""
    if q <= 128 and k <= 128:
        for t in (16, 8, 4, 2):
            if t <= b and b % t == 0:
                return t
    return 1


@jax.jit
def dot_product_attention(queries, keys, values, valid_lens=None):
    """queries (B,Q,D), keys (B,K,D), values (B,K,Dv), valid_lens (B,) int32 or None."""
    B, Q, D = queries.shape
    _, K, _ = keys.shape
    Dv = values.shape[-1]

    if valid_lens is None:
        valid_lens = jnp.full((B,), K, dtype=jnp.int32)
    valid_lens = valid_lens.astype(jnp.int32)
    vl3d = valid_lens.reshape(B, 1, 1)

    tb = _pick_batch_tile(B, Q, K)
    tq = _pick_seq_tile(Q, 256)   # conservative so tiles also fit v7x's smaller VMEM
    tk = _pick_seq_tile(K, 512)
    scale = 1.0 / math.sqrt(D)

    kernel = functools.partial(_flash_attn_kernel, scale=scale, tb=tb, tk=tk)

    grid_spec = pltpu.PrefetchScalarGridSpec(
        num_scalar_prefetch=1,
        grid=(B // tb, Q // tq, K // tk),
        in_specs=[
            pl.BlockSpec((tb, tq, D), lambda b, qi, ki, vl: (b, qi, 0)),
            pl.BlockSpec((tb, tk, D), lambda b, qi, ki, vl: (b, ki, 0)),
            pl.BlockSpec((tb, tk, Dv), lambda b, qi, ki, vl: (b, ki, 0)),
            pl.BlockSpec((tb, 1, 1), lambda b, qi, ki, vl: (b, 0, 0)),
        ],
        out_specs=pl.BlockSpec((tb, tq, Dv), lambda b, qi, ki, vl: (b, qi, 0)),
        scratch_shapes=[
            pltpu.VMEM((tb, tq, 1), jnp.float32),    # running max m
            pltpu.VMEM((tb, tq, 1), jnp.float32),    # running denom l
            pltpu.VMEM((tb, tq, Dv), jnp.float32),   # running numerator acc
        ],
    )

    return pl.pallas_call(
        kernel,
        out_shape=jax.ShapeDtypeStruct((B, Q, Dv), queries.dtype),
        grid_spec=grid_spec,
        compiler_params=pltpu.CompilerParams(
            dimension_semantics=("parallel", "parallel", "arbitrary")),
    )(valid_lens, queries, keys, values, vl3d)


def _reference(queries, keys, values, valid_lens):
    """Pure-JAX reference reproducing the PyTorch module semantics."""
    d = queries.shape[-1]
    scores = jnp.einsum("bqd,bkd->bqk", queries, keys) / math.sqrt(d)
    col = jnp.arange(scores.shape[-1])[None, None, :]
    mask = col < valid_lens[:, None, None]
    scores = jnp.where(mask, scores, -1000000.0)
    w = jax.nn.softmax(scores, axis=-1)
    return jnp.einsum("bqk,bkv->bqv", w, values)


if __name__ == "__main__":
    key = jax.random.PRNGKey(0)
    B, Q, K, D, Dv = 2, 8, 8, 32, 32

    kq, kk, kv = jax.random.split(key, 3)
    queries = jax.random.normal(kq, (B, Q, D), dtype=jnp.float32)
    keys = jax.random.normal(kk, (B, K, D), dtype=jnp.float32)
    values = jax.random.normal(kv, (B, K, Dv), dtype=jnp.float32)
    valid_lens = jnp.array([3, 6], dtype=jnp.int32)

    out = dot_product_attention(queries, keys, values, valid_lens)
    out = jax.block_until_ready(out)

    ref = _reference(queries, keys, values, valid_lens)
    assert out.shape == (B, Q, Dv)
    # Tolerance loosened vs. 1e-5 because pl.reciprocal(approx=True) is used for
    # the softmax denominator (per performance guidance).
    assert jnp.allclose(out, ref, atol=1e-2, rtol=1e-2), "mismatch vs reference"

    print("KERNEL_OK")
</pallas_src>

<mosaic_0001>
module attributes {stable_mosaic.version = 11 : i64} {
  func.func @_flash_attn_kernel(%arg0: i32, %arg1: i32, %arg2: i32, %arg3: memref<2xi32, #tpu.memory_space<smem>>, %arg4: memref<2x8x32xf32, #tpu.memory_space<vmem>>, %arg5: memref<2x8x32xf32, #tpu.memory_space<vmem>>, %arg6: memref<2x8x32xf32, #tpu.memory_space<vmem>>, %arg7: memref<2x1x1xi32, #tpu.memory_space<vmem>>, %arg8: memref<2x8x32xf32, #tpu.memory_space<vmem>>, %arg9: memref<2x8x1xf32, #tpu.memory_space<vmem>>, %arg10: memref<2x8x1xf32, #tpu.memory_space<vmem>>, %arg11: memref<2x8x32xf32, #tpu.memory_space<vmem>>) attributes {dimension_semantics = [#tpu.dimension_semantics<parallel>, #tpu.dimension_semantics<parallel>, #tpu.dimension_semantics<arbitrary>], iteration_bounds = array<i64: 1, 1, 1>, scalar_prefetch = 1 : i64, scratch_operands = 3 : i64, tpu.core_type = #tpu.core_type<tc>, window_params = [{transform_indices = @transform_0, window_bounds = array<i64: 2, 8, 32>}, {transform_indices = @transform_1, window_bounds = array<i64: 2, 8, 32>}, {transform_indices = @transform_2, window_bounds = array<i64: 2, 8, 32>}, {transform_indices = @transform_3, window_bounds = array<i64: 2, 1, 1>}, {transform_indices = @transform_4, window_bounds = array<i64: 2, 8, 32>}]} {
    %c2_i32 = arith.constant 2 : i32
    %0 = arith.muli %arg0, %c2_i32 : i32
    %c8_i32 = arith.constant 8 : i32
    %1 = arith.muli %arg2, %c8_i32 : i32
    %c0_i32 = arith.constant 0 : i32
    %2 = arith.cmpi eq, %arg2, %c0_i32 : i32
    %3 = arith.extui %2 : i1 to i32
    %c0_i32_0 = arith.constant 0 : i32
    %4 = arith.cmpi ne, %3, %c0_i32_0 : i32
    scf.if %4 {
      %cst = arith.constant 0xFF800000 : f32
      %19 = vector.broadcast %cst : f32 to vector<2x8x1xf32>
      %c0 = arith.constant 0 : index
      %c0_5 = arith.constant 0 : index
      %c0_6 = arith.constant 0 : index
      %20 = vector.load %arg9[%c0, %c0_5, %c0_6] : memref<2x8x1xf32, #tpu.memory_space<vmem>>, vector<2x8x1xf32>
      tpu.vector_store %arg9[%c0, %c0_5, %c0_6], %19 {strides = array<i32>} : memref<2x8x1xf32, #tpu.memory_space<vmem>>, vector<2x8x1xf32>,
      %cst_7 = arith.constant 0.000000e+00 : f32
      %21 = vector.broadcast %cst_7 : f32 to vector<2x8x1xf32>
      %c0_8 = arith.constant 0 : index
      %c0_9 = arith.constant 0 : index
      %c0_10 = arith.constant 0 : index
      %22 = vector.load %arg10[%c0_8, %c0_9, %c0_10] : memref<2x8x1xf32, #tpu.memory_space<vmem>>, vector<2x8x1xf32>
      tpu.vector_store %arg10[%c0_8, %c0_9, %c0_10], %21 {strides = array<i32>} : memref<2x8x1xf32, #tpu.memory_space<vmem>>, vector<2x8x1xf32>,
      %cst_11 = arith.constant 0.000000e+00 : f32
      %23 = vector.broadcast %cst_11 : f32 to vector<2x8x32xf32>
      %c0_12 = arith.constant 0 : index
      %c0_13 = arith.constant 0 : index
      %c0_14 = arith.constant 0 : index
      %24 = vector.load %arg11[%c0_12, %c0_13, %c0_14] : memref<2x8x32xf32, #tpu.memory_space<vmem>>, vector<2x8x32xf32>
      tpu.vector_store %arg11[%c0_12, %c0_13, %c0_14], %23 {strides = array<i32>} : memref<2x8x32xf32, #tpu.memory_space<vmem>>, vector<2x8x32xf32>,
    } else {
    }
    %5 = arith.index_cast %0 : i32 to index
    %6 = memref.load %arg3[%5] : memref<2xi32, #tpu.memory_space<smem>>
    %c1_i32 = arith.constant 1 : i32
    %7 = arith.addi %0, %c1_i32 : i32
    %8 = arith.index_cast %7 : i32 to index
    %9 = memref.load %arg3[%8] : memref<2xi32, #tpu.memory_space<smem>>
    %10 = arith.maxsi %6, %9 : i32
    %c0_i32_1 = arith.constant 0 : i32
    %11 = arith.cmpi eq, %arg2, %c0_i32_1 : i32
    %12 = arith.cmpi slt, %1, %10 : i32
    %13 = arith.ori %11, %12 : i1
    %14 = arith.extui %13 : i1 to i32
    %c0_i32_2 = arith.constant 0 : i32
    %15 = arith.cmpi ne, %14, %c0_i32_2 : i32
    scf.if %15 {
      %c0 = arith.constant 0 : index
      %c0_5 = arith.constant 0 : index
      %c0_6 = arith.constant 0 : index
      %19 = vector.load %arg4[%c0, %c0_5, %c0_6] : memref<2x8x32xf32, #tpu.memory_space<vmem>>, vector<2x8x32xf32>
      %c0_7 = arith.constant 0 : index
      %c0_8 = arith.constant 0 : index
      %c0_9 = arith.constant 0 : index
      %20 = vector.load %arg5[%c0_7, %c0_8, %c0_9] : memref<2x8x32xf32, #tpu.memory_space<vmem>>, vector<2x8x32xf32>
      %c0_10 = arith.constant 0 : index
      %c0_11 = arith.constant 0 : index
      %c0_12 = arith.constant 0 : index
      %21 = vector.load %arg6[%c0_10, %c0_11, %c0_12] : memref<2x8x32xf32, #tpu.memory_space<vmem>>, vector<2x8x32xf32>
      %cst = arith.constant dense<0.000000e+00> : vector<2x8x8xf32>
      %22 = tpu.matmul %19, %20, %cst {dimension_numbers = #tpu.dot_dimension_numbers<[2], [2], [1], [1], [0, 0, 0, 1, 1, 1], [0], [0]>} : vector<2x8x32xf32>, vector<2x8x32xf32>, vector<2x8x8xf32> -> vector<2x8x8xf32>
      %cst_13 = arith.constant 0.176776692 : f32
      %23 = vector.broadcast %cst_13 : f32 to vector<2x8x8xf32>
      %24 = arith.mulf %22, %23 : vector<2x8x8xf32>
      %25 = tpu.iota {dimensions = array<i32: 2>} : vector<2x8x8xi32>
      %26 = vector.broadcast %1 : i32 to vector<2x8x8xi32>
      %27 = arith.addi %25, %26 : vector<2x8x8xi32>
      %c0_14 = arith.constant 0 : index
      %c0_15 = arith.constant 0 : index
      %c0_16 = arith.constant 0 : index
      %28 = vector.load %arg7[%c0_14, %c0_15, %c0_16] : memref<2x1x1xi32, #tpu.memory_space<vmem>>, vector<2x1x1xi32>
      %29 = vector.broadcast %28 : vector<2x1x1xi32> to vector<2x8x8xi32>
      %30 = arith.cmpi slt, %27, %29 : vector<2x8x8xi32>
      %cst_17 = arith.constant -1.000000e+06 : f32
      %31 = vector.broadcast %cst_17 : f32 to vector<2x8x8xf32>
      %32 = arith.select %30, %24, %31 : vector<2x8x8xi1>, vector<2x8x8xf32>
      %c0_18 = arith.constant 0 : index
      %c0_19 = arith.constant 0 : index
      %c0_20 = arith.constant 0 : index
      %33 = vector.load %arg9[%c0_18, %c0_19, %c0_20] : memref<2x8x1xf32, #tpu.memory_space<vmem>>, vector<2x8x1xf32>
      %cst_21 = arith.constant dense<0xFF800000> : vector<2x8xf32>
      %34 = vector.multi_reduction <maximumf>, %32, %cst_21 [2] : vector<2x8x8xf32> to vector<2x8xf32>
      %35 = vector.shape_cast %34 : vector<2x8xf32> to vector<2x8x1xf32>
      %36 = arith.maximumf %33, %35 : vector<2x8x1xf32>
      %37 = arith.subf %33, %36 : vector<2x8x1xf32>
      %38 = math.exp %37 : vector<2x8x1xf32>
      %39 = vector.broadcast %36 : vector<2x8x1xf32> to vector<2x8x8xf32>
      %40 = arith.subf %32, %39 : vector<2x8x8xf32>
      %41 = math.exp %40 : vector<2x8x8xf32>
      %c0_22 = arith.constant 0 : index
      %c0_23 = arith.constant 0 : index
      %c0_24 = arith.constant 0 : index
      %42 = vector.load %arg10[%c0_22, %c0_23, %c0_24] : memref<2x8x1xf32, #tpu.memory_space<vmem>>, vector<2x8x1xf32>
      %43 = arith.mulf %38, %42 : vector<2x8x1xf32>
      %cst_25 = arith.constant dense<0.000000e+00> : vector<2x8xf32>
      %44 = vector.multi_reduction <add>, %41, %cst_25 [2] : vector<2x8x8xf32> to vector<2x8xf32>
      %45 = vector.shape_cast %44 : vector<2x8xf32> to vector<2x8x1xf32>
      %46 = arith.addf %43, %45 : vector<2x8x1xf32>
      %c0_26 = arith.constant 0 : index
      %c0_27 = arith.constant 0 : index
      %c0_28 = arith.constant 0 : index
      %47 = vector.load %arg10[%c0_26, %c0_27, %c0_28] : memref<2x8x1xf32, #tpu.memory_space<vmem>>, vector<2x8x1xf32>
      tpu.vector_store %arg10[%c0_26, %c0_27, %c0_28], %46 {strides = array<i32>} : memref<2x8x1xf32, #tpu.memory_space<vmem>>, vector<2x8x1xf32>,
      %cst_29 = arith.constant dense<0.000000e+00> : vector<2x8x32xf32>
      %48 = tpu.matmul %41, %21, %cst_29 {dimension_numbers = #tpu.dot_dimension_numbers<[2], [1], [1], [2], [0, 0, 0, 1, 1, 2], [0], [0]>} : vector<2x8x8xf32>, vector<2x8x32xf32>, vector<2x8x32xf32> -> vector<2x8x32xf32>
      %c0_30 = arith.constant 0 : index
      %c0_31 = arith.constant 0 : index
      %c0_32 = arith.constant 0 : index
      %49 = vector.load %arg11[%c0_30, %c0_31, %c0_32] : memref<2x8x32xf32, #tpu.memory_space<vmem>>, vector<2x8x32xf32>
      %50 = vector.broadcast %38 : vector<2x8x1xf32> to vector<2x8x32xf32>
      %51 = arith.mulf %50, %49 : vector<2x8x32xf32>
      %52 = arith.addf %51, %48 : vector<2x8x32xf32>
      %c0_33 = arith.constant 0 : index
      %c0_34 = arith.constant 0 : index
      %c0_35 = arith.constant 0 : index
      %53 = vector.load %arg11[%c0_33, %c0_34, %c0_35] : memref<2x8x32xf32, #tpu.memory_space<vmem>>, vector<2x8x32xf32>
      tpu.vector_store %arg11[%c0_33, %c0_34, %c0_35], %52 {strides = array<i32>} : memref<2x8x32xf32, #tpu.memory_space<vmem>>, vector<2x8x32xf32>,
      %c0_36 = arith.constant 0 : index
      %c0_37 = arith.constant 0 : index
      %c0_38 = arith.constant 0 : index
      %54 = vector.load %arg9[%c0_36, %c0_37, %c0_38] : memref<2x8x1xf32, #tpu.memory_space<vmem>>, vector<2x8x1xf32>
      tpu.vector_store %arg9[%c0_36, %c0_37, %c0_38], %36 {strides = array<i32>} : memref<2x8x1xf32, #tpu.memory_space<vmem>>, vector<2x8x1xf32>,
    } else {
    }
    %c0_i32_3 = arith.constant 0 : i32
    %16 = arith.cmpi eq, %arg2, %c0_i32_3 : i32
    %17 = arith.extui %16 : i1 to i32
    %c0_i32_4 = arith.constant 0 : i32
    %18 = arith.cmpi ne, %17, %c0_i32_4 : i32
    scf.if %18 {
      %c0 = arith.constant 0 : index
      %c0_5 = arith.constant 0 : index
      %c0_6 = arith.constant 0 : index
      %19 = vector.load %arg10[%c0, %c0_5, %c0_6] : memref<2x8x1xf32, #tpu.memory_space<vmem>>, vector<2x8x1xf32>
      %20 = tpu.reciprocal %19 {approx = true} : vector<2x8x1xf32> -> vector<2x8x1xf32>
      %c0_7 = arith.constant 0 : index
      %c0_8 = arith.constant 0 : index
      %c0_9 = arith.constant 0 : index
      %21 = vector.load %arg11[%c0_7, %c0_8, %c0_9] : memref<2x8x32xf32, #tpu.memory_space<vmem>>, vector<2x8x32xf32>
      %22 = vector.broadcast %20 : vector<2x8x1xf32> to vector<2x8x32xf32>
      %23 = arith.mulf %21, %22 : vector<2x8x32xf32>
      %c0_10 = arith.constant 0 : index
      %c0_11 = arith.constant 0 : index
      %c0_12 = arith.constant 0 : index
      %24 = vector.load %arg8[%c0_10, %c0_11, %c0_12] : memref<2x8x32xf32, #tpu.memory_space<vmem>>, vector<2x8x32xf32>
      tpu.vector_store %arg8[%c0_10, %c0_11, %c0_12], %23 {strides = array<i32>} : memref<2x8x32xf32, #tpu.memory_space<vmem>>, vector<2x8x32xf32>,
    } else {
    }
    return
  }
  func.func @transform_0(%arg0: i32, %arg1: i32, %arg2: i32, %arg3: memref<2xi32, #tpu.memory_space<smem>>) -> (i32, i32, i32) {
    %c0_i32 = arith.constant 0 : i32
    %c0_i32_0 = arith.constant 0 : i32
    return %arg0, %arg1, %c0_i32 : i32, i32, i32
  }
  func.func @transform_1(%arg0: i32, %arg1: i32, %arg2: i32, %arg3: memref<2xi32, #tpu.memory_space<smem>>) -> (i32, i32, i32) {
    %c0_i32 = arith.constant 0 : i32
    %c0_i32_0 = arith.constant 0 : i32
    return %arg0, %arg2, %c0_i32 : i32, i32, i32
  }
  func.func @transform_2(%arg0: i32, %arg1: i32, %arg2: i32, %arg3: memref<2xi32, #tpu.memory_space<smem>>) -> (i32, i32, i32) {
    %c0_i32 = arith.constant 0 : i32
    %c0_i32_0 = arith.constant 0 : i32
    return %arg0, %arg2, %c0_i32 : i32, i32, i32
  }
  func.func @transform_3(%arg0: i32, %arg1: i32, %arg2: i32, %arg3: memref<2xi32, #tpu.memory_space<smem>>) -> (i32, i32, i32) {
    %c0_i32 = arith.constant 0 : i32
    %c0_i32_0 = arith.constant 0 : i32
    %c0_i32_1 = arith.constant 0 : i32
    return %arg0, %c0_i32, %c0_i32_0 : i32, i32, i32
  }
  func.func @transform_4(%arg0: i32, %arg1: i32, %arg2: i32, %arg3: memref<2xi32, #tpu.memory_space<smem>>) -> (i32, i32, i32) {
    %c0_i32 = arith.constant 0 : i32
    %c0_i32_0 = arith.constant 0 : i32
    return %arg0, %arg1, %c0_i32 : i32, i32, i32
  }
}

</mosaic_0001>

<bundles_post_ra>
// kernel: dot_product_attention.1
= control target key start
LH: loop header
LB: loop body
LE: loop exit
PB: predicated region body
PF: predicated region fallthrough
CT: control target
= control target key end

     0   :  { %s796_s0 = inlined_call_operand.vmem [shape: s32[2], index: 0, kind: input, shape index: {}]   ;;  %s797_s1 = inlined_call_operand.hbm [shape: f32[2,8,32], index: 1, kind: input, shape index: {}]   ;;  %s798_s2 = inlined_call_operand.hbm [shape: f32[2,8,32], index: 2, kind: input, shape index: {}]   ;;  %s799_s3 = inlined_call_operand.hbm [shape: f32[2,8,32], index: 3, kind: input, shape index: {}]   ;;  %s800_s4 = inlined_call_operand.vmem [shape: s32[2,1,1], index: 4, kind: input, shape index: {}]   ;;  %s801_s5 = inlined_call_operand.hbm [shape: f32[2,8,32], index: 5, kind: output, shape index: {}]  }
   0x1   :  { %s10_s20 = sshll.u32 %s796_s0, 4  ;;  %s11_s20 = int_to_ptr.vmem [resolvable:$true] %s10_s20 }
   0x2   :  { %s594_s21 = scalar_lea.vmem %s11_s20, 16  ;;  %p599_p1 = scmp.lt.s32.totalorder %s11_s20, %s11_s20 }
   0x3   :  { %p595_p0 = scmp.ne.s32.totalorder %s11_s20, %s594_s21  ;;  %p600_p2 = scmp.lt.s32.totalorder %s594_s21, %s594_s21 }
   0x5   :  { %p601_p3 = por %p600_p2, %p599_p1 }
   0x7   :  { %p602_p4 = pnand %p601_p3, %p595_p0 }
   0x9   :  { %605 = shalt.err (!%p602_p4)  }
   0xa   :  { %s694_s22 = smov [#allocation6]  }
   0xb   :  { %13 = dma.vmem_to_smem %s11_s20, 16, %s694_s22, [#allocation5] }
   0xc   :  { %686 = dma.done.wait [#allocation5], 16 }
   0xd   :  { %687 = vsyncadd [#allocation5], 4294967280 }
   0xe   :  { %15 = sfence }
   0xf   :  { %16 = vsyncpa [#allocation8], 0 }
  0x10   :  { %17 = vsyncpa [#allocation11], 0 }
  0x11   :  { %18 = vsyncpa [#allocation9], 0  ;;  %s695_s23 = smov [#allocation10]   ;;  %s696_s25 = smov [#allocation7]  }
  0x12   :  { %s36_s24 = sshll.u32 %s695_s23, 4  ;;  %s24_s0 = sshll.u32 %s696_s25, 4  ;;  %s37_s24 = int_to_ptr.vmem [resolvable:$true] %s36_s24  ;;  %s25_s0 = int_to_ptr.vmem [resolvable:$true] %s24_s0 }
  0x13   :  { %s614_s26 = scalar_lea.vmem %s37_s24, 256  ;;  %p619_p6 = scmp.lt.s32.totalorder %s37_s24, %s37_s24 }
  0x14   :  { %p615_p5 = scmp.ne.s32.totalorder %s37_s24, %s614_s26  ;;  %p620_p7 = scmp.lt.s32.totalorder %s614_s26, %s614_s26 }
  0x16   :  { %p621_p8 = por %p620_p7, %p619_p6 }
  0x18   :  { %p622_p9 = pnand %p621_p8, %p615_p5 }
  0x1a   :  { %625 = shalt.err (!%p622_p9)
}
  0x1b   :  { %s697_s27 = smov 128   ;;  %s698_s28 = smov 8  }
  0x1c   :  { %42 = dma.hbm_to_vmem [thread:$0]  %s798_s2, 256, %s37_s24, [#allocation11], %s697_s27, %s697_s27, %s698_s28  }
  0x1d   :  { %s634_s6 = scalar_lea.vmem %s25_s0, 256  ;;  %p639_p11 = scmp.lt.s32.totalorder %s25_s0, %s25_s0 }
  0x1e   :  { %p635_p10 = scmp.ne.s32.totalorder %s25_s0, %s634_s6  ;;  %p640_p12 = scmp.lt.s32.totalorder %s634_s6, %s634_s6 }
  0x20   :  { %p641_p13 = por %p640_p12, %p639_p11 }
  0x22   :  { %p642_p0 = pnand %p641_p13, %p635_p10 }
  0x24   :  { %645 = shalt.err (!%p642_p0)
}
  0x25   :  { %30 = dma.hbm_to_vmem [thread:$0]  %s797_s1, 256, %s25_s0, [#allocation8], %s697_s27, %s697_s27, %s698_s28  }
  0x26   :  { %s699_s9 = smov [#allocation12]  }
  0x27   :  { %s48_s10 = sshll.u32 %s699_s9, 4  ;;  %s49_s10 = int_to_ptr.vmem [resolvable:$true] %s48_s10 }
  0x28   :  { %s654_s11 = scalar_lea.vmem %s49_s10, 256  ;;  %p659_p2 = scmp.lt.s32.totalorder %s49_s10, %s49_s10 }
  0x29   :  { %p655_p1 = scmp.ne.s32.totalorder %s49_s10, %s654_s11  ;;  %p660_p3 = scmp.lt.s32.totalorder %s654_s11, %s654_s11 }
  0x2b   :  { %p661_p4 = por %p660_p3, %p659_p2 }
  0x2d   :  { %p662_p5 = pnand %p661_p4, %p655_p1 }
  0x2f   :  { %665 = shalt.err (!%p662_p5)
}
  0x30   :  { %54 = dma.hbm_to_vmem [thread:$0]  %s799_s3, 256, %s49_s10, [#allocation11], %s697_s27, %s697_s27, %s698_s28  }
  0x31   :  { %688 = dma.done.wait [#allocation8], 256  }
  0x32   :  { %689 = vsyncadd [#allocation8], 4294967040 }
  0x33   :  { %690 = dma.done.wait [#allocation11], 512  }
  0x34   :  { %691 = vsyncadd [#allocation11], 4294966784  ;;  %vm77_vm0 = vcmask 261120   ;;  %v700_v0 = vmov 0.0   ;;  %vm701_vm1 = vmmov 0   ;;  %v702_v1 = vmov 0  }
  0x35   :  { %549 = vmatprep.subr.mxu0 %v700_v0  ;;  %554 = vmatprep.subr.mxu1 %v700_v0  ;;  %78 = vst.msk [vmem:[#allocation4] sm:$0xff] %vm77_vm0, %v700_v0  ;;  %79 = vst.msk [vmem:[#allocation4 + $0x8] sm:$0xff] %vm77_vm0, %v700_v0  ;;  %v92_v2 = vld [vmem:[#allocation10] sm:$0xff]  ;;  %v93_v3 = vld [vmem:[#allocation10 + $0x8] sm:$0xff]  ;;  %vm72_vm2 = vcmask 7168   ;;  %v703_v8 = vmov -inf   ;;  %v251_v9 = vlaneseq }
  0x36   :  { %551 = vmatprep.mubr.msk.f32.mxu0 %vm701_vm1, %v700_v0  ;;  %556 = vmatprep.mubr.msk.f32.mxu1 %vm701_vm1, %v700_v0  ;;  %v90_v4 = vld [vmem:[#allocation7] sm:$0xff]  ;;  %v91_v5 = vld [vmem:[#allocation7 + $0x8] sm:$0xff]  ;;  %v537_v6 = vld [vmem:[%s800_s4] ss:$0 sm:$0xff]  ;;  %73 = vst.msk [vmem:[#allocation2] sm:$0xff] %vm72_vm2, %v703_v8  ;;  %vm277_vm4 = vcmask 64512  }
  0x37   :  { %580 = vset.pattern.permute.xlu0 %v702_v1  ;;  %581 = vset.pattern.permute.xlu1 %v702_v1  ;;  %v538_v7 = vld [vmem:[%s800_s4 + $0x1] ss:$0 sm:$0xff]  ;;  %74 = vst.msk [vmem:[#allocation2 + $0x8] sm:$0xff] %vm72_vm2, %v703_v8  ;;  %75 = vst.msk [vmem:[#allocation3] sm:$0xff] %vm72_vm2, %v700_v0  ;;  %v252_v11 = vand.u32 127, %v251_v9  ;;  %v94_v31 = vld [vmem:[#allocation12] sm:$0xff] }
  0x38   :  { %550 = vmatpush3.xpose.msk.msra.mxu0 %vm77_vm0, %v92_v2  ;;  %555 = vmatpush3.xpose.msk.msra.mxu1 %vm77_vm0, %v93_v3  ;;  %76 = vst.msk [vmem:[#allocation3 + $0x8] sm:$0xff] %vm72_vm2, %v700_v0  ;;  %v95_v32 = vld [vmem:[#allocation12 + $0x8] sm:$0xff]  ;;  %s704_s4 = smov [#allocation13]  }
  0x39   :  { %266 = vperm.xlu0 %580, %v537_v6   ;;  %559 = vmatprep.subr.mxu0 %v700_v0  ;;  %s518_s15 = sshll.u32 %s704_s4, 4  ;;  %s519_s15 = int_to_ptr.vmem [resolvable:$true] %s518_s15 }
  0x3a   :  { %564 = vmatprep.subr.mxu1 %v700_v0  ;;  %s666_s16 = scalar_lea.vmem %s519_s15, 256  ;;  %p671_p7 = scmp.lt.s32.totalorder %s519_s15, %s519_s15 }
  0x3b   :  { %552 = vmatmul.mubr.msk.f32.vlgmr.msra.gmra.mxu0 %vm77_vm0, %v90_v4  ;;  %557 = vmatmul.mubr.msk.f32.vlgmr.msra.gmra.mxu1 %vm77_vm0, %v91_v5  ;;  %p667_p6 = scmp.ne.s32.totalorder %s519_s15, %s666_s16  ;;  %p672_p8 = scmp.lt.s32.totalorder %s666_s16, %s666_s16 }
  0x3c   :  { %561 = vmatprep.mubr.msk.f32.mxu0 %vm701_vm1, %v700_v0  ;;  %566 = vmatprep.mubr.msk.f32.mxu1 %vm701_vm1, %v700_v0  ;;  %v469_v59 = vld [vmem:[#allocation4] sm:$0xff]  ;;  %v470_v62 = vld [vmem:[#allocation4 + $0x8] sm:$0xff] }
  0x3d   :  { %269 = vperm.xlu0 %580, %v538_v7   ;;  %v275_v23 = vld [vmem:[#allocation2] sm:$0xff]  ;;  %560 = vmatpush3.msra.mxu0 %v94_v31  ;;  %p673_p9 = por %p672_p8, %p671_p7 }
  0x3e   :  { %v276_v26 = vld [vmem:[#allocation2 + $0x8] sm:$0xff]  ;;  %565 = vmatpush3.msra.mxu1 %v95_v32  ;;  %v308_v47 = vld [vmem:[#allocation3] sm:$0xff] }
  0x3f   :  { %v309_v50 = vld [vmem:[#allocation3 + $0x8] sm:$0xff]  ;;  %p674_p10 = pnand %p673_p9, %p667_p6 }
  0xb4   :  { %v267_v10 = vpop.permute.xlu0 %266 }
  0xb5   :  { %vm271_vm3 = vcmp.lt.s32.totalorder %v252_v11, %v267_v10 }
  0xb8   :  { %v270_v12 = vpop.permute.xlu0 %269 }
  0xb9   :  { %vm272_vm5 = vcmp.lt.s32.totalorder %v252_v11, %v270_v12 }
  0xfb   :  { %v169_v13 = vpop.f32.mrf.mxu0  ;;  %v245_v14 = vpop.f32.mrf.mxu1 }
  0xfc   :  { %v249_v15 = vmul.f32 0.17677669, %v169_v13  ;;  %v250_v16 = vmul.f32 0.17677669, %v245_v14 }
  0xfd   :  { %v553_v17 = vpop.f32.mrf.mxu0  ;;  %v558_v18 = vpop.f32.mrf.mxu1 }
  0xfe   :  { %v273_v19 = vsel %vm271_vm3, %v249_v15, -1000000.0  ;;  %v274_v21 = vsel %vm272_vm5, %v250_v16, -1000000.0 }
  0xff   :  { %v278_v20 = vsel %vm277_vm4, %v273_v19, -inf  ;;  %v281_v22 = vsel %vm277_vm4, %v274_v21, -inf }
 0x100   :  { %279 = vmax.xlane.f32.xlu1 %v278_v20 }
 0x104   :  { %282 = vmax.xlane.f32.xlu1 %v281_v22 }
 0x189   :  { %v280_v24 = vpop.xlane.xlu1 %279 }
 0x18a   :  { %v284_v25 = vmax.f32 %v275_v23, %v280_v24 }
 0x18c   :  { %v286_v27 = vsub.f32 %v275_v23, %v284_v25  ;;  %487 = vst.msk [vmem:[#allocation2] sm:$0xff] %vm72_vm2, %v284_v25  ;;  %294 = vperm.xlu0 %580, %v284_v25  }
 0x18d   :  { %v283_v28 = vpop.xlane.xlu1 %282 }
 0x18e   :  { %v285_v29 = vmax.f32 %v276_v26, %v283_v28  ;;  %v288_v44 = vmul.f32 1.442695, %v286_v27 }
 0x190   :  { %v287_v30 = vsub.f32 %v276_v26, %v285_v29  ;;  %488 = vst.msk [vmem:[#allocation2 + $0x8] sm:$0xff] %vm72_vm2, %v285_v29  ;;  %299 = vperm.xlu1 %581, %v285_v29  }
 0x192   :  { %v290_v42 = vmul.f32 1.442695, %v287_v30 }
 0x207   :  { %v295_v33 = vpop.permute.xlu0 %294 }
 0x208   :  { %v302_v34 = vsub.f32 %v273_v19, %v295_v33 }
 0x20a   :  { %v304_v35 = vmul.f32 1.442695, %v302_v34 }
 0x20b   :  { %v300_v36 = vpop.permute.xlu1 %299 }
 0x20c   :  { %582 = vpow2.f32 %v304_v35  ;;  %v303_v37 = vsub.f32 %v274_v21, %v300_v36 }
 0x20e   :  { %v306_v38 = vmul.f32 1.442695, %v303_v37 }
 0x210   :  { %584 = vpow2.f32 %v306_v38 }
 0x211   :  { %586 = vpow2.f32 %v290_v42 }
 0x212   :  { %588 = vpow2.f32 %v288_v44 }
 0x219   :  { %v583_v39 = vpop.eup %582 }
 0x21a   :  { %562 = vmatmul.mubr.msk.f32.vlgmr.msra.gmra.mxu0 %vm277_vm4, %v583_v39  ;;  %v312_v40 = vsel %vm277_vm4, %v583_v39, 0.0 }
 0x21b   :  { %313 = vadd.xlane.f32.xlu0 %v312_v40 }
 0x21d   :  { %v585_v41 = vpop.eup %584 }
 0x21e   :  { %567 = vmatmul.mubr.msk.f32.vlgmr.msra.gmra.mxu1 %vm277_vm4, %v585_v41  ;;  %v315_v43 = vsel %vm277_vm4, %v585_v41, 0.0  ;;  %v587_v45 = vpop.eup %586 }
 0x21f   :  { %316 = vadd.xlane.f32.xlu1 %v315_v43  ;;  %v589_v46 = vpop.eup %588  ;;  %v311_v52 = vmul.f32 %v587_v45, %v309_v50 }
 0x220   :  { %v310_v48 = vmul.f32 %v589_v46, %v308_v47 }
 0x230   :  { %478 = vperm.xlu1 %581, %v587_v45  }
 0x231   :  { %473 = vperm.xlu0 %580, %v589_v46  }
 0x2a4   :  { %v314_v49 = vpop.xlane.xlu0 %313 }
 0x2a5   :  { %v318_v51 = vadd.f32 %v314_v49, %v310_v48 }
 0x2a7   :  { %321 = vst.msk [vmem:[#allocation3] sm:$0xff] %vm72_vm2, %v318_v51 }
 0x2a8   :  { %v317_v53 = vpop.xlane.xlu1 %316 }
 0x2a9   :  { %v319_v54 = vadd.f32 %v317_v53, %v311_v52 }
 0x2ab   :  { %322 = vst.msk [vmem:[#allocation3 + $0x8] sm:$0xff] %vm72_vm2, %v319_v54 }
 0x2ac   :  { %v474_v60 = vpop.permute.xlu0 %473  ;;  %v479_v63 = vpop.permute.xlu1 %478 }
 0x2ad   :  { %v481_v61 = vmul.f32 %v474_v60, %v469_v59  ;;  %v482_v3 = vmul.f32 %v479_v63, %v470_v62 }
 0x2ae   :  { %v492_v55 = vld [vmem:[#allocation3] sm:$0xff] }
 0x2af   :  { %590 = vrcp.f32 %v492_v55 }
 0x2b2   :  { %v493_v56 = vld [vmem:[#allocation3 + $0x8] sm:$0xff] }
 0x2b3   :  { %592 = vrcp.f32 %v493_v56 }
 0x2bc   :  { %v591_v57 = vpop.eup %590 }
 0x2bd   :  { %500 = vperm.xlu0 %580, %v591_v57  }
 0x2c0   :  { %v593_v58 = vpop.eup %592 }
 0x2c1   :  { %505 = vperm.xlu0 %580, %v593_v58  }
 0x2da   :  { %v392_v0 = vpop.f32.mrf.mxu0 }
 0x2db   :  { %v483_v1 = vadd.f32 %v481_v61, %v392_v0 }
 0x2dc   :  { %v563_v2 = vpop.f32.mrf.mxu0 }
 0x2dd   :  { %485 = vst.msk [vmem:[#allocation4] sm:$0xff] %vm77_vm0, %v483_v1 }
 0x2de   :  { %v465_v4 = vpop.f32.mrf.mxu1 }
 0x2df   :  { %v484_v5 = vadd.f32 %v482_v3, %v465_v4 }
 0x2e0   :  { %v568_v6 = vpop.f32.mrf.mxu1 }
 0x2e1   :  { %486 = vst.msk [vmem:[#allocation4 + $0x8] sm:$0xff] %vm77_vm0, %v484_v5 }
 0x2e4   :  { %v496_v7 = vld [vmem:[#allocation4] sm:$0xff] }
 0x2e8   :  { %v497_v10 = vld [vmem:[#allocation4 + $0x8] sm:$0xff] }
 0x338   :  { %v501_v8 = vpop.permute.xlu0 %500 }
 0x339   :  { %v508_v9 = vmul.f32 %v501_v8, %v496_v7 }
 0x33b   :  { %511 = vst.msk [vmem:[#allocation13] sm:$0xff] %vm77_vm0, %v508_v9 }
 0x33c   :  { %v506_v11 = vpop.permute.xlu0 %505 }
 0x33d   :  { %v509_v12 = vmul.f32 %v506_v11, %v497_v10 }
 0x33f   :  { %512 = vst.msk [vmem:[#allocation13 + $0x8] sm:$0xff] %vm77_vm0, %v509_v12 }
 0x340   :  { %677 = shalt.err (!%p674_p10)
}
 0x341   :  { %524 = dma.vmem_to_hbm [thread:$0]  %s519_s15, 256, %s801_s5, [#allocation9], %s697_s27, %s697_s27, %s698_s28  }
 0x342   :  { %692 = dma.done.wait [#allocation9], 256  }
 0x343   :  { %693 = vsyncadd [#allocation9], 4294967040 }
 0x344   :  { %528 = vsyncpa [#allocation8], 1 }
 0x345   :  { %529 = vsyncpa [#allocation11], 1 }
 0x346   :  { %530 = vsyncpa [#allocation9], 1 }

</bundles_post_ra>
